<compile_context>
chip_gen: v6e
topology: v6e:2x2x1
jax: 0.10.0
libtpu: 0.0.40
codegen_flags: <defaults>
</compile_context>

<pallas_src>
import functools

import jax
import jax.numpy as jnp
from jax import lax
from jax.experimental import pallas as pl
from jax.experimental.pallas import tpu as pltpu

VMEM_LIMIT = 32 * 1024 * 1024

# Static per-stage configuration (spatial size pinned at 224x224 by fc1 = Linear(32*56*56, 128)).
CONV1 = dict(cout=16, cin=3, cin_p=8, w_in=256, conv_h=224, conv_w=224,
             out_col_off=1, rows_per_iter=4, ch_per_step=8, prpc=1)
CONV2 = dict(cout=32, cin=16, cin_p=16, w_in=128, conv_h=112, conv_w=112,
             out_col_off=0, rows_per_iter=4, ch_per_step=4, prpc=2)


# ---------------------------------------------------------------------------
# Fused Conv3x3(pad=1) + BN(eval, scale folded into weights) + ReLU + MaxPool2x2.
# x_ref : [Cin_p, L] flattened zero-padded image (row stride w_in, multiple of 128).
# o_ref : [Cout, block_lanes]; every 128-lane chunk packs `prpc` pooled rows.
# ---------------------------------------------------------------------------
def _conv_bn_relu_pool_kernel(w_ref, shift_ref, sel_ref, x_ref, o_ref, *,
                              cout, w_in, rows_per_iter, ch_per_step, prpc):
    span = rows_per_iter * w_in
    n_pool = rows_per_iter // 2
    chunks_per_iter = n_pool // prpc
    ext_len = (rows_per_iter + 2) * w_in + 128
    strip = pl.program_id(1)
    shift = shift_ref[...]                              # [cout, 1] f32 (hoisted)

    def process_block(i):
        base_row = (strip * ch_per_step + i) * rows_per_iter
        start = pl.multiple_of(base_row * w_in, w_in)
        ext = x_ref[:, pl.ds(start, ext_len)]           # one load per row block
        acc = jnp.zeros((cout, span), jnp.float32)
        for ky in range(3):                             # kx taps fused per ky
            base = ky * w_in
            rhs = jnp.concatenate(
                [ext[:, base:base + span],
                 ext[:, base + 1:base + 1 + span],
                 ext[:, base + 2:base + 2 + span]], axis=0)
            acc = acc + jnp.dot(w_ref[ky], rhs.astype(jnp.bfloat16),
                                preferred_element_type=jnp.float32)
        acc = jnp.maximum(acc + shift, 0.0)             # folded-BN shift + ReLU
        # 2x2 max-pool: row-pair max (aligned slices), column-pair max via XLU roll,
        # then a single 0/1 selection matmul packs pooled rows into a 128-lane chunk
        # (also producing the zero pad lanes the next stage expects).
        for q in range(chunks_per_iter):
            chunk = jnp.zeros((cout, 128), jnp.float32)
            for r in range(prpc):
                j = q * prpc + r
                rmax = jnp.maximum(acc[:, (2 * j) * w_in:(2 * j + 1) * w_in],
                                   acc[:, (2 * j + 1) * w_in:(2 * j + 2) * w_in])
                cmax = jnp.maximum(rmax, pltpu.roll(rmax, 1, axis=1))
                chunk = chunk + jnp.dot(cmax.astype(jnp.bfloat16), sel_ref[r],
                                        preferred_element_type=jnp.float32)
            off = pl.multiple_of((i * chunks_per_iter + q) * 128, 128)
            o_ref[:, pl.ds(off, 128)] = chunk.astype(o_ref.dtype)

    # 2x manual unroll so one block's VPU/pool epilogue overlaps the next block's
    # MXU tap contractions inside a single scheduling region.
    @pl.loop(0, ch_per_step // 2)
    def _(i2):
        process_block(i2 * 2)
        process_block(i2 * 2 + 1)


def conv3x3_bn_relu_pool(x, w3, shift, sel, cfg, out_dtype):
    N, cin_p, l_in = x.shape
    cout, w_in = cfg["cout"], cfg["w_in"]
    conv_h, rows_per_iter = cfg["conv_h"], cfg["rows_per_iter"]
    ch_per_step, prpc = cfg["ch_per_step"], cfg["prpc"]
    n_pool = rows_per_iter // 2
    assert rows_per_iter % 2 == 0 and n_pool % prpc == 0
    chunks_per_iter = n_pool // prpc
    assert conv_h % rows_per_iter == 0
    n_blocks = conv_h // rows_per_iter
    assert n_blocks % ch_per_step == 0 and ch_per_step % 2 == 0
    n_strips = n_blocks // ch_per_step
    assert l_in % 128 == 0 and l_in >= (conv_h + 2) * w_in + 128
    block_lanes = ch_per_step * chunks_per_iter * 128
    total_lanes = n_blocks * chunks_per_iter * 128

    kernel = functools.partial(
        _conv_bn_relu_pool_kernel, cout=cout, w_in=w_in,
        rows_per_iter=rows_per_iter, ch_per_step=ch_per_step, prpc=prpc)
    return pl.pallas_call(
        kernel,
        grid=(N, n_strips),
        in_specs=[
            pl.BlockSpec((3, cout, w3.shape[-1]), lambda n, s: (0, 0, 0)),
            pl.BlockSpec((cout, 1), lambda n, s: (0, 0)),
            pl.BlockSpec((prpc, w_in, 128), lambda n, s: (0, 0, 0)),
            pl.BlockSpec((None, cin_p, l_in), lambda n, s: (n, 0, 0)),
        ],
        out_specs=pl.BlockSpec((None, cout, block_lanes), lambda n, s: (n, 0, s)),
        out_shape=jax.ShapeDtypeStruct((N, cout, total_lanes), out_dtype),
        compiler_params=pltpu.CompilerParams(
            dimension_semantics=("parallel", "parallel"),
            vmem_limit_bytes=VMEM_LIMIT),
    )(w3, shift.reshape(cout, 1), sel, x)


# ---------------------------------------------------------------------------
# Fused fc1 (K-tiled bf16 MXU matmul, f32 accumulator) + ReLU + fc2.
# The F1=128 hidden dim is sharded into two 64-wide halves on a parallel grid axis
# (both v7x TensorCores stream the fc1 weight); per-half fc2 partials are summed
# outside (fc2 is linear, ReLU is elementwise per hidden column).
# ---------------------------------------------------------------------------
def _fc_fused_kernel(x_ref, w1_ref, b1_ref, w2_ref, o_ref, acc_ref):
    k = pl.program_id(1)

    @pl.when(k == 0)
    def _():
        acc_ref[...] = jnp.zeros_like(acc_ref)

    acc_ref[...] += jnp.dot(x_ref[...], w1_ref[...],
                            preferred_element_type=jnp.float32)

    @pl.when(k == pl.num_programs(1) - 1)
    def _():
        h = jnp.maximum(acc_ref[...] + b1_ref[...], 0.0)
        o_ref[...] = jnp.dot(h, w2_ref[...], preferred_element_type=jnp.float32)


def fc1_relu_fc2(x, w1, b1, w2, b2, *, block_k):
    # x: [N, K] bf16; w1: [2, K, 64] bf16; b1: [2, 1, 64]; w2: [2, 64, 2] f32.
    N, K = x.shape
    nf, _, f1h = w1.shape
    F2 = w2.shape[-1]
    assert K % block_k == 0
    parts = pl.pallas_call(
        _fc_fused_kernel,
        grid=(nf, K // block_k),
        in_specs=[
            pl.BlockSpec((N, block_k), lambda f, k: (0, k)),
            pl.BlockSpec((None, block_k, f1h), lambda f, k: (f, k, 0)),
            pl.BlockSpec((None, 1, f1h), lambda f, k: (f, 0, 0)),
            pl.BlockSpec((None, f1h, F2), lambda f, k: (f, 0, 0)),
        ],
        out_specs=pl.BlockSpec((None, N, F2), lambda f, k: (f, 0, 0)),
        out_shape=jax.ShapeDtypeStruct((nf, N, F2), jnp.float32),
        scratch_shapes=[pltpu.VMEM((N, f1h), jnp.float32)],
        compiler_params=pltpu.CompilerParams(
            dimension_semantics=("parallel", "arbitrary"),
            vmem_limit_bytes=VMEM_LIMIT),
    )(x, w1, b1, w2)
    return parts.sum(axis=0) + b2


# ---------------------------------------------------------------------------
# Parameters (torch layout) + one-time conversion into kernel layout.
# ---------------------------------------------------------------------------
def init_params(key):
    ks = jax.random.split(key, 16)
    f32 = jnp.float32
    return {
        "conv1_w": 0.10 * jax.random.normal(ks[0], (16, 3, 3, 3), f32),
        "conv1_b": 0.05 * jax.random.normal(ks[1], (16,), f32),
        "bn1_gamma": 1.0 + 0.1 * jax.random.normal(ks[2], (16,), f32),
        "bn1_beta": 0.1 * jax.random.normal(ks[3], (16,), f32),
        "bn1_mean": 0.1 * jax.random.normal(ks[4], (16,), f32),
        "bn1_var": jax.random.uniform(ks[5], (16,), f32, 0.5, 1.5),
        "conv2_w": 0.05 * jax.random.normal(ks[6], (32, 16, 3, 3), f32),
        "conv2_b": 0.05 * jax.random.normal(ks[7], (32,), f32),
        "bn2_gamma": 1.0 + 0.1 * jax.random.normal(ks[8], (32,), f32),
        "bn2_beta": 0.1 * jax.random.normal(ks[9], (32,), f32),
        "bn2_mean": 0.1 * jax.random.normal(ks[10], (32,), f32),
        "bn2_var": jax.random.uniform(ks[11], (32,), f32, 0.5, 1.5),
        "fc1_w": 0.01 * jax.random.normal(ks[12], (128, 32 * 56 * 56), f32),
        "fc1_b": 0.01 * jax.random.normal(ks[13], (128,), f32),
        "fc2_w": 0.10 * jax.random.normal(ks[14], (2, 128), f32),
        "fc2_b": 0.01 * jax.random.normal(ks[15], (2,), f32),
    }


def fold_bn(gamma, beta, mean, var, conv_b, eps=1e-5):
    scale = gamma / jnp.sqrt(var + eps)
    shift = beta + (conv_b - mean) * scale
    return scale, shift


def _pack_conv_weights(w, scale, cin_p):
    """torch OIHW conv weight with folded BN scale -> [3 (ky), cout, 3*cin_p] bf16,
    laid out to match the kernel's kx-concatenated slab (row index = kx*cin_p + c)."""
    cout, cin = w.shape[0], w.shape[1]
    ws = w * scale[:, None, None, None]
    ws = jnp.transpose(ws, (2, 3, 0, 1))                        # [ky, kx, cout, cin]
    ws = jnp.pad(ws, ((0, 0), (0, 0), (0, 0), (0, cin_p - cin)))
    ws = jnp.transpose(ws, (0, 2, 1, 3)).reshape(3, cout, 3 * cin_p)
    return ws.astype(jnp.bfloat16)


def _roll_parity():
    """Probe pltpu.roll's direction once so the pool selector pairs correctly with
    cmax = max(rmax, roll(rmax, 1)): returns 1 if the column-pair max lands on odd
    conv columns (np.roll convention), else 0."""
    def k(x_ref, o_ref):
        o_ref[...] = pltpu.roll(x_ref[...], 1, axis=1)
    x = jnp.broadcast_to(jnp.arange(128, dtype=jnp.float32)[None, :], (8, 128))
    y = pl.pallas_call(k, out_shape=jax.ShapeDtypeStruct((8, 128), jnp.float32))(x)
    v = int(y[0, 1])
    assert v in (0, 2), f"unexpected roll behaviour: {v}"
    return 1 if v == 0 else 0


def _pool_selector(cfg, parity):
    """Exact 0/1 matrices: conv column (2*rel + parity) of pool-row r -> output lane
    out_col_off + r*pool_w + rel; all other output lanes (incl. padding) are zero."""
    w_in, prpc = cfg["w_in"], cfg["prpc"]
    pool_w, off = cfg["conv_w"] // 2, cfg["out_col_off"]
    lane = jnp.arange(128)[None, :]
    col = jnp.arange(w_in)[:, None]
    mats = []
    for r in range(prpc):
        rel = lane - (off + r * pool_w)
        valid = (rel >= 0) & (rel < pool_w)
        mats.append((valid & (col == 2 * rel + parity)).astype(jnp.bfloat16))
    return jnp.stack(mats)                                      # [prpc, w_in, 128]


def prepare_params(p):
    """One-time conversion of torch-layout params into kernel-friendly layout."""
    s1, sh1 = fold_bn(p["bn1_gamma"], p["bn1_beta"], p["bn1_mean"],
                      p["bn1_var"], p["conv1_b"])
    s2, sh2 = fold_bn(p["bn2_gamma"], p["bn2_beta"], p["bn2_mean"],
                      p["bn2_var"], p["conv2_b"])
    parity = _roll_parity()
    # fc1 weight [128, 32*56*56] (torch (c,h,w) flatten) -> packed conv2-output
    # layout: per channel, 28 chunks of 128 lanes holding pooled rows (2q, 2q+1) at
    # lanes [0,56)/[56,112), lanes [112,128) zero.  Stored [K,128] bf16, then split
    # into two 64-wide hidden halves -> [2, K, 64] (per-TensorCore shard on v7x).
    fw1 = p["fc1_w"].reshape(128, 32, 28, 112)
    fw1 = jnp.pad(fw1, ((0, 0), (0, 0), (0, 0), (0, 16)))
    fw1 = fw1.reshape(128, 32 * 28 * 128).T.astype(jnp.bfloat16)   # [K, 128]
    fw1 = fw1.reshape(-1, 2, 64).transpose(1, 0, 2)                # [2, K, 64]
    fb1 = p["fc1_b"].reshape(2, 1, 64)
    fw2 = p["fc2_w"].T.reshape(2, 64, 2)                           # [2, 64, 2]
    return {
        "c1_w": _pack_conv_weights(p["conv1_w"], s1, CONV1["cin_p"]),
        "c1_shift": sh1, "c1_sel": _pool_selector(CONV1, parity),
        "c2_w": _pack_conv_weights(p["conv2_w"], s2, CONV2["cin_p"]),
        "c2_shift": sh2, "c2_sel": _pool_selector(CONV2, parity),
        "fc1_w": fw1, "fc1_b": fb1, "fc2_w": fw2, "fc2_b": p["fc2_b"],
    }


# ---------------------------------------------------------------------------
# Full forward pass.
# ---------------------------------------------------------------------------
def pneumonia_cnn_forward(x, cp):
    # x: [N, 3, 224, 224] float32 (NCHW).
    N = x.shape[0]
    # Conv1 input: channels 3->8, rows +1/+2, cols +1/+31 -> [N,8,227,256], flattened.
    x1 = jnp.pad(x, ((0, 0), (0, 5), (1, 2), (1, 31))).reshape(N, 8, 227 * 256)
    h1 = conv3x3_bn_relu_pool(x1, cp["c1_w"], cp["c1_shift"], cp["c1_sel"],
                              CONV1, jnp.bfloat16)
    # h1: [N,16,112*128] bf16; pooled row q occupies lanes [1,113) of chunk q.
    # TODO(synk): the single top/bottom zero-pad rows between conv1 and conv2 are
    #             still added with a cheap wrapper-side jnp.pad (~0.5 MB/img bf16).
    x2 = jnp.pad(h1, ((0, 0), (0, 0), (128, 256)))
    h2 = conv3x3_bn_relu_pool(x2, cp["c2_w"], cp["c2_shift"], cp["c2_sel"],
                              CONV2, jnp.bfloat16)
    # h2: [N,32,28*128] bf16 == packed fc1 activation (matches prepared fc1_w).
    act = h2.reshape(N, 32 * 28 * 128)
    return fc1_relu_fc2(act, cp["fc1_w"], cp["fc1_b"], cp["fc2_w"], cp["fc2_b"],
                        block_k=28672)


# ---------------------------------------------------------------------------
# Pure-JAX reference (same eval-mode BN fold; f32 convs; bf16 rounding on the fc path).
# ---------------------------------------------------------------------------
def reference_forward(x, p):
    def bn(h, gamma, beta, mean, var, b):
        scale, shift = fold_bn(gamma, beta, mean, var, b)
        return h * scale[None, :, None, None] + shift[None, :, None, None]

    def pool(h):
        n, c, hh, ww = h.shape
        return h.reshape(n, c, hh // 2, 2, ww // 2, 2).max(axis=(3, 5))

    dn = ("NCHW", "OIHW", "NCHW")
    h = lax.conv_general_dilated(x, p["conv1_w"], (1, 1), ((1, 1), (1, 1)),
                                 dimension_numbers=dn)
    h = pool(jnp.maximum(bn(h, p["bn1_gamma"], p["bn1_beta"], p["bn1_mean"],
                            p["bn1_var"], p["conv1_b"]), 0.0))
    h = lax.conv_general_dilated(h, p["conv2_w"], (1, 1), ((1, 1), (1, 1)),
                                 dimension_numbers=dn)
    h = pool(jnp.maximum(bn(h, p["bn2_gamma"], p["bn2_beta"], p["bn2_mean"],
                            p["bn2_var"], p["conv2_b"]), 0.0))
    a = h.reshape(x.shape[0], -1).astype(jnp.bfloat16).astype(jnp.float32)
    w1 = p["fc1_w"].astype(jnp.bfloat16).astype(jnp.float32)
    h1 = jnp.maximum(a @ w1.T + p["fc1_b"], 0.0)
    return h1 @ p["fc2_w"].T + p["fc2_b"]


if __name__ == "__main__":
    root = jax.random.PRNGKey(0)
    k_params, k_x = jax.random.split(root)
    torch_params = init_params(k_params)
    kernel_params = prepare_params(torch_params)
    # fc1 = Linear(32*56*56, 128) pins the spatial size at 224x224; batch kept small.
    x = jax.random.normal(k_x, (2, 3, 224, 224), jnp.float32)

    out = jax.block_until_ready(jax.jit(pneumonia_cnn_forward)(x, kernel_params))
    assert out.shape == (2, 2) and out.dtype == jnp.float32

    ref = reference_forward(x, torch_params)
    tol = 5e-2 * (1.0 + float(jnp.max(jnp.abs(ref))))
    assert float(jnp.max(jnp.abs(out - ref))) < tol, \
        f"max abs err {float(jnp.max(jnp.abs(out - ref)))} vs tol {tol}"
    print("KERNEL_OK")
</pallas_src>

<mosaic_0001>
module attributes {stable_mosaic.version = 11 : i64} {
  func.func @k(%arg0: memref<8x128xf32, #tpu.memory_space<vmem>>, %arg1: memref<8x128xf32, #tpu.memory_space<vmem>>) attributes {dimension_semantics = [], scalar_prefetch = 0 : i64, scratch_operands = 0 : i64, tpu.core_type = #tpu.core_type<tc>} {
    %c0 = arith.constant 0 : index
    %c0_0 = arith.constant 0 : index
    %0 = vector.load %arg0[%c0, %c0_0] : memref<8x128xf32, #tpu.memory_space<vmem>>, vector<8x128xf32>
    %c1_i32 = arith.constant 1 : i32
    %1 = tpu.dynamic_rotate %0 by %c1_i32 dim 1 : vector<8x128xf32>, i32 -> vector<8x128xf32>
    %c0_1 = arith.constant 0 : index
    %c0_2 = arith.constant 0 : index
    %2 = vector.load %arg1[%c0_1, %c0_2] : memref<8x128xf32, #tpu.memory_space<vmem>>, vector<8x128xf32>
    tpu.vector_store %arg1[%c0_1, %c0_2], %1 {strides = array<i32>} : memref<8x128xf32, #tpu.memory_space<vmem>>, vector<8x128xf32>,
    return
  }
}

</mosaic_0001>

<bundles_post_ra>
// kernel: tpu_custom_call.1
= control target key start
LH: loop header
LB: loop body
LE: loop exit
PB: predicated region body
PF: predicated region fallthrough
CT: control target
= control target key end

     0   :  { %6 = vsyncpa [#allocation3], 0  ;;  %s106_s0 = inlined_call_operand.hbm [shape: f32[8,128], index: 0, kind: input, shape index: {}]   ;;  %s107_s1 = inlined_call_operand.hbm [shape: f32[8,128], index: 1, kind: output, shape index: {}]  }
   0x1   :  { %7 = vsyncpa [#allocation4], 0  ;;  %s87_s6 = smov [#allocation2]  }
   0x2   :  { %s14_s7 = sshll.u32 %s87_s6, 4  ;;  %s15_s7 = int_to_ptr.vmem [resolvable:$true] %s14_s7 }
   0x3   :  { %s51_s8 = scalar_lea.vmem %s15_s7, 128  ;;  %p56_p1 = scmp.lt.s32.totalorder %s15_s7, %s15_s7 }
   0x4   :  { %p52_p0 = scmp.ne.s32.totalorder %s15_s7, %s51_s8  ;;  %p57_p2 = scmp.lt.s32.totalorder %s51_s8, %s51_s8 }
   0x6   :  { %p58_p3 = por %p57_p2, %p56_p1 }
   0x8   :  { %p59_p4 = pnand %p58_p3, %p52_p0 }
   0xa   :  { %62 = shalt.err (!%p59_p4)
}
   0xb   :  { %17 = dma.hbm_to_vmem [thread:$0]  %s106_s0, 128, %s15_s7, [#allocation3]  }
   0xc   :  { %83 = dma.done.wait [#allocation3], 128  }
   0xd   :  { %84 = vsyncadd [#allocation3], 4294967168  ;;  %v21_v0 = vld [vmem:[#allocation2] sm:$0xff]  ;;  %s88_s11 = smov 1   ;;  %s89_s12 = smov [#allocation5]  }
   0xe   :  { %22 = vrot.lane.b32.xlu0 %v21_v0, %s88_s11  ;;  %s31_s13 = sshll.u32 %s89_s12, 4  ;;  %s32_s13 = int_to_ptr.vmem [resolvable:$true] %s31_s13 }
   0xf   :  { %s63_s14 = scalar_lea.vmem %s32_s13, 128  ;;  %p68_p6 = scmp.lt.s32.totalorder %s32_s13, %s32_s13 }
  0x10   :  { %p64_p5 = scmp.ne.s32.totalorder %s32_s13, %s63_s14  ;;  %p69_p7 = scmp.lt.s32.totalorder %s63_s14, %s63_s14 }
  0x12   :  { %p70_p8 = por %p69_p7, %p68_p6 }
  0x14   :  { %p71_p9 = pnand %p70_p8, %p64_p5 }
  0x80   :  { %v23_v1 = vpop.permute.xlu0 %22 }
  0x81   :  { %24 = vst [vmem:[#allocation5] sm:$0xff] %v23_v1 }
  0x82   :  { %74 = shalt.err (!%p71_p9)
}
  0x83   :  { %34 = dma.vmem_to_hbm [thread:$0]  %s32_s13, 128, %s107_s1, [#allocation4]  }
  0x84   :  { %85 = dma.done.wait [#allocation4], 128  }
  0x85   :  { %86 = vsyncadd [#allocation4], 4294967168 }
  0x86   :  { %38 = vsyncpa [#allocation3], 1 }
  0x87   :  { %39 = vsyncpa [#allocation4], 1 }

</bundles_post_ra>
